<compile_context>
chip_gen: v7x
topology: tpu7x:2x2x1
jax: 0.10.0
libtpu: 0.0.40
codegen_flags: <defaults>
</compile_context>

<pallas_src>
import functools

import jax
import jax.numpy as jnp
from jax.experimental import pallas as pl
from jax.experimental.pallas import tpu as pltpu


def _focus_conv_kernel(x_ref, w_ref, shift_ref, o_ref):
    # x_ref: (K, tL) activations in input dtype; w_ref: (C2, K) conv weight with BN
    # scale folded in; shift_ref: (C2, 1) folded BN shift (f32); o_ref: (C2, tL).
    acc = jnp.dot(w_ref[...], x_ref[...], preferred_element_type=jnp.float32)
    y = acc + shift_ref[...]                        # BatchNorm shift (scale folded into weight)
    y = jnp.where(y > 0, y, jnp.float32(0.1) * y)   # LeakyReLU(0.1)
    o_ref[...] = y.astype(o_ref.dtype)


@functools.partial(jax.jit, static_argnames=("tl",))
def focus_forward(x_nchw, w_conv, bn_gamma, bn_beta, bn_mean, bn_var, *, tl=8192):
    """Focus.forward with k=1, s=1, g=1, act=True (eval-mode BatchNorm, LeakyReLU 0.1)."""
    eps = 1e-5
    N, C1, H, W = x_nchw.shape
    C2 = w_conv.shape[0]
    H2, W2 = H // 2, W // 2
    K = 4 * C1
    L = H2 * W2
    in_dtype = x_nchw.dtype

    # --- space-to-depth: one fused transpose in the ORIGINAL dtype (no cast, no pad).
    # combined channel index = (2*wp + hp)*C1 + c  ==  torch.cat([a, b, c, d], dim=1).
    x6 = x_nchw.reshape(N, C1, H2, 2, W2, 2)
    xf = jnp.transpose(x6, (0, 5, 3, 1, 2, 4)).reshape(N, K, L)

    # --- fold eval-mode BatchNorm:  y = (w * scale) @ x + shift
    scale = bn_gamma.astype(jnp.float32) * jax.lax.rsqrt(bn_var.astype(jnp.float32) + eps)
    shift = (bn_beta.astype(jnp.float32) - bn_mean.astype(jnp.float32) * scale).reshape(C2, 1)
    w2d = (w_conv[:, :, 0, 0].astype(jnp.float32) * scale[:, None]).astype(in_dtype)   # (C2, K)

    # --- lane tiling: K / C2 are kept as full block dims (no padding needed); the lane
    # dim is either a multiple of 128 or the full spatial extent L.  No output slice.
    tl = max(128, (tl // 128) * 128)
    if L % 128 == 0:
        tL = min(tl, L)       # 128-multiple lane tile; ragged last tile masked by Pallas
    else:
        tL = L                # full-extent lane block (always a legal BlockSpec)
    grid = (N, pl.cdiv(L, tL))

    itm = in_dtype.itemsize
    block_bytes = 2 * K * tL * itm + 2 * C2 * tL * itm + C2 * K * itm + C2 * 4
    vmem_limit = int(min(48 * 2**20, max(2 * block_bytes + (2 << 20), 16 * 2**20)))

    out = pl.pallas_call(
        _focus_conv_kernel,
        out_shape=jax.ShapeDtypeStruct((N, C2, L), in_dtype),
        grid=grid,
        in_specs=[
            pl.BlockSpec((None, K, tL), lambda n, l: (n, 0, l)),   # activations (batch squeezed)
            pl.BlockSpec((C2, K), lambda n, l: (0, 0)),            # folded weight (resident)
            pl.BlockSpec((C2, 1), lambda n, l: (0, 0)),            # folded BN shift (resident)
        ],
        out_specs=pl.BlockSpec((None, C2, tL), lambda n, l: (n, 0, l)),
        compiler_params=pltpu.CompilerParams(
            dimension_semantics=("parallel", "parallel"),
            vmem_limit_bytes=vmem_limit,
        ),
    )(xf, w2d, shift)

    # (N, C2, H2*W2) -> (N, C2, H2, W2): contiguous metadata reshape, no extra HBM pass.
    return out.reshape(N, C2, H2, W2)


def _reference(x_nchw, w_conv, bn_gamma, bn_beta, bn_mean, bn_var):
    eps = 1e-5
    x = x_nchw.astype(jnp.float32)
    a = x[..., ::2, ::2]
    b = x[..., 1::2, ::2]
    c = x[..., ::2, 1::2]
    d = x[..., 1::2, 1::2]
    xf = jnp.concatenate([a, b, c, d], axis=1)
    y = jnp.einsum("nkhw,ok->nohw", xf, w_conv[:, :, 0, 0].astype(jnp.float32))
    scale = bn_gamma / jnp.sqrt(bn_var + eps)
    shift = bn_beta - bn_mean * scale
    y = y * scale[None, :, None, None] + shift[None, :, None, None]
    return jnp.where(y > 0, y, 0.1 * y)


def _make_case(key, N, C1, H, W, C2, dtype):
    k_x, k_w, k_g, k_b, k_m, k_v = jax.random.split(key, 6)
    x = jax.random.normal(k_x, (N, C1, H, W), dtype=jnp.float32).astype(dtype)
    w_conv = (0.1 * jax.random.normal(k_w, (C2, 4 * C1, 1, 1), dtype=jnp.float32)).astype(dtype)
    bn_gamma = 1.0 + 0.1 * jax.random.normal(k_g, (C2,), dtype=jnp.float32)
    bn_beta = 0.1 * jax.random.normal(k_b, (C2,), dtype=jnp.float32)
    bn_mean = 0.05 * jax.random.normal(k_m, (C2,), dtype=jnp.float32)
    bn_var = jnp.abs(1.0 + 0.1 * jax.random.normal(k_v, (C2,), dtype=jnp.float32))
    return x, w_conv, bn_gamma, bn_beta, bn_mean, bn_var


if __name__ == "__main__":
    key = jax.random.PRNGKey(0)
    k0, k1, k2 = jax.random.split(key, 3)

    # Case 1: baseline small shape, f32.
    args = _make_case(k0, 2, 4, 16, 16, 32, jnp.float32)
    out = jax.block_until_ready(focus_forward(*args))
    ref = _reference(*args)
    assert out.shape == (2, 32, 8, 8), out.shape
    assert jnp.allclose(out, ref, atol=1e-4, rtol=1e-4), "mismatch (f32 case)"

    # Case 2: ragged dims (K=12 not multiple of 8, L=100 not multiple of 128, C2=30), f32.
    args = _make_case(k1, 2, 3, 20, 20, 30, jnp.float32)
    out = jax.block_until_ready(focus_forward(*args))
    ref = _reference(*args)
    assert out.shape == (2, 30, 10, 10), out.shape
    assert jnp.allclose(out, ref, atol=1e-4, rtol=1e-4), "mismatch (ragged f32 case)"

    # Case 3: bf16 activations/weights end-to-end (native MXU dtype path).
    args = _make_case(k2, 2, 4, 16, 16, 32, jnp.bfloat16)
    out = jax.block_until_ready(focus_forward(*args))
    ref = _reference(*args)
    assert out.shape == (2, 32, 8, 8), out.shape
    assert out.dtype == jnp.bfloat16, out.dtype
    assert jnp.allclose(out.astype(jnp.float32), ref, atol=3e-2, rtol=3e-2), "mismatch (bf16 case)"

    print("KERNEL_OK")
</pallas_src>

<mosaic_0001>
module attributes {stable_mosaic.version = 11 : i64} {
  func.func @_focus_conv_kernel(%arg0: i32, %arg1: i32, %arg2: memref<1x16x64xf32, #tpu.memory_space<vmem>>, %arg3: memref<32x16xf32, #tpu.memory_space<vmem>>, %arg4: memref<32x1xf32, #tpu.memory_space<vmem>>, %arg5: memref<1x32x64xf32, #tpu.memory_space<vmem>>) attributes {dimension_semantics = [#tpu.dimension_semantics<parallel>, #tpu.dimension_semantics<parallel>], iteration_bounds = array<i64: 2, 1>, scalar_prefetch = 0 : i64, scratch_operands = 0 : i64, tpu.core_type = #tpu.core_type<tc>, window_params = [{transform_indices = @transform_0, window_bounds = array<i64: 1, 16, 64>}, {pipeline_mode = #tpu.pipeline_mode<synchronous>, transform_indices = @transform_1, window_bounds = array<i64: 32, 16>}, {pipeline_mode = #tpu.pipeline_mode<synchronous>, transform_indices = @transform_2, window_bounds = array<i64: 32, 1>}, {transform_indices = @transform_3, window_bounds = array<i64: 1, 32, 64>}]} {
    %c0 = arith.constant 0 : index
    %c0_0 = arith.constant 0 : index
    %0 = vector.load %arg3[%c0, %c0_0] : memref<32x16xf32, #tpu.memory_space<vmem>>, vector<32x16xf32>
    %c0_1 = arith.constant 0 : index
    %c0_2 = arith.constant 0 : index
    %c0_3 = arith.constant 0 : index
    %1 = vector.load %arg2[%c0_1, %c0_2, %c0_3] : memref<1x16x64xf32, #tpu.memory_space<vmem>>, vector<1x16x64xf32>
    %2 = vector.shape_cast %1 : vector<1x16x64xf32> to vector<16x64xf32>
    %cst = arith.constant dense<0.000000e+00> : vector<32x64xf32>
    %3 = tpu.matmul %0, %2, %cst {dimension_numbers = #tpu.dot_dimension_numbers<[1], [0], [0], [1], [0, 0, 1, 1], [], []>} : vector<32x16xf32>, vector<16x64xf32>, vector<32x64xf32> -> vector<32x64xf32>
    %c0_4 = arith.constant 0 : index
    %c0_5 = arith.constant 0 : index
    %4 = vector.load %arg4[%c0_4, %c0_5] : memref<32x1xf32, #tpu.memory_space<vmem>>, vector<32x1xf32>
    %5 = vector.broadcast %4 : vector<32x1xf32> to vector<32x64xf32>
    %6 = arith.addf %3, %5 : vector<32x64xf32>
    %cst_6 = arith.constant 0.000000e+00 : f32
    %7 = vector.broadcast %cst_6 : f32 to vector<32x64xf32>
    %8 = arith.cmpf ogt, %6, %7 : vector<32x64xf32>
    %cst_7 = arith.constant 1.000000e-01 : f32
    %9 = vector.broadcast %cst_7 : f32 to vector<32x64xf32>
    %10 = arith.mulf %9, %6 : vector<32x64xf32>
    %11 = arith.select %8, %6, %10 : vector<32x64xi1>, vector<32x64xf32>
    %c0_8 = arith.constant 0 : index
    %c0_9 = arith.constant 0 : index
    %c0_10 = arith.constant 0 : index
    %12 = vector.load %arg5[%c0_8, %c0_9, %c0_10] : memref<1x32x64xf32, #tpu.memory_space<vmem>>, vector<1x32x64xf32>
    %13 = vector.shape_cast %12 : vector<1x32x64xf32> to vector<32x64xf32>
    %14 = vector.shape_cast %11 : vector<32x64xf32> to vector<1x32x64xf32>
    tpu.vector_store %arg5[%c0_8, %c0_9, %c0_10], %14 {strides = array<i32>} : memref<1x32x64xf32, #tpu.memory_space<vmem>>, vector<1x32x64xf32>,
    return
  }
  func.func @transform_0(%arg0: i32, %arg1: i32) -> (i32, i32, i32) {
    %c0_i32 = arith.constant 0 : i32
    %c0_i32_0 = arith.constant 0 : i32
    return %arg0, %c0_i32, %arg1 : i32, i32, i32
  }
  func.func @transform_1(%arg0: i32, %arg1: i32) -> (i32, i32) {
    %c0_i32 = arith.constant 0 : i32
    %c0_i32_0 = arith.constant 0 : i32
    %c0_i32_1 = arith.constant 0 : i32
    return %c0_i32, %c0_i32_0 : i32, i32
  }
  func.func @transform_2(%arg0: i32, %arg1: i32) -> (i32, i32) {
    %c0_i32 = arith.constant 0 : i32
    %c0_i32_0 = arith.constant 0 : i32
    %c0_i32_1 = arith.constant 0 : i32
    return %c0_i32, %c0_i32_0 : i32, i32
  }
  func.func @transform_3(%arg0: i32, %arg1: i32) -> (i32, i32, i32) {
    %c0_i32 = arith.constant 0 : i32
    %c0_i32_0 = arith.constant 0 : i32
    return %arg0, %c0_i32, %arg1 : i32, i32, i32
  }
}

</mosaic_0001>

<bundles_post_ra>
// kernel: focus_forward.1
= control target key start
LH: loop header
LB: loop body
LE: loop exit
PB: predicated region body
PF: predicated region fallthrough
CT: control target
= control target key end

     0   :  { %s541_s12 = smov 0   ;;  %s543_s13 = smov 0   ;;  %s610_s0 = inlined_call_operand.vmem [shape: f32[2,16,64], index: 0, kind: input, shape index: {}]   ;;  %s611_s1 = inlined_call_operand.vmem [shape: f32[32,16], index: 1, kind: input, shape index: {}]   ;;  %s612_s2 = inlined_call_operand.vmem [shape: f32[32,1], index: 2, kind: input, shape index: {}]   ;;  %s613_s3 = inlined_call_operand.vmem [shape: f32[2,32,64], index: 3, kind: output, shape index: {}]  }
   0x1   :  { %s545_s14 = smov 0  }
   0x2 LB: > { %s25_s15 = sadd.s32 1, %s514_s13  ;;  %p434_p0 = scmp.ge.s32.totalorder %s518_s14, 1  ;;  %s518_s14 = sphi %s545_s14, %s13_s14   ;;  %s514_s13 = sphi %s543_s13, %s615_s13   ;;  %s510_s12 = sphi %s541_s12, %s614_s12  }
   0x3   : > { %p27_p1 = scmp.ge.s32.totalorder %s25_s15, 2  ;;  %p156_p2 = scmp.lt.s32.totalorder %s518_s14, 3 }
   0x5   : > { %s617_s15 = smov (%p27_p1, %s25_s15), 0  ;;  %p157_p3 = pnand %p434_p0, %p156_p2 }
   0x6   : > { %p186_p4 = scmp.lt.s32.totalorder (!%p157_p3), %s510_s12, 1  ;;  %v202_v0 = vld [vmem:[%s611_s1] sm:$0xff] (!%p157_p3)  ;;  %vm232_vm0 = vcmask (!%p157_p3), 130048   ;;  %v204_v1 = vld [vmem:[%s611_s1 + $0x10] sm:$0xff] (!%p157_p3)  ;;  %v520_v4 = vmov (!%p157_p3), 0   ;;  %v211_v5 = vld [vmem:[%s612_s2 + $0x18] sm:$0xff] (!%p157_p3) }
   0x7   : > { %160 = sbr.rel (%p157_p3) target bundleno = 243 (0xf3), region = 32  ;;  %457 = vmatprep.mubr.msk.f32.mxu0 (!%p157_p3), %vm232_vm0, %v202_v0  ;;  %460 = vmatprep.mubr.msk.f32.mxu1 (!%p157_p3), %vm232_vm0, %v204_v1  ;;  %v210_v2 = vld [vmem:[%s612_s2 + $0x10] sm:$0xff] (!%p157_p3)  ;;  %v208_v3 = vld [vmem:[%s612_s2] sm:$0xff] (!%p157_p3)  ;;  %v209_v6 = vld [vmem:[%s612_s2 + $0x8] sm:$0xff] (!%p157_p3)  ;;  %vm342_vm1 = vcmask (!%p157_p3), 523264  }
   0x8   : > { %495 = vset.pattern.permute.xlu1 (!%p157_p3), %v520_v4  ;;  %494 = vset.pattern.permute.xlu0 (!%p157_p3), %v520_v4  ;;  %v203_v10 = vld [vmem:[%s611_s1 + $0x8] sm:$0xff] (!%p157_p3)  ;;  %v205_v11 = vld [vmem:[%s611_s1 + $0x18] sm:$0xff] (!%p157_p3) }
   0x9   : > { %224 = vperm.xlu1 (!%p157_p3), %495, %v210_v2   ;;  %214 = vperm.xlu0 (!%p157_p3), %494, %v208_v3  }
   0xd   : > { %229 = vperm.xlu1 (!%p157_p3), %495, %v211_v5   ;;  %219 = vperm.xlu0 (!%p157_p3), %494, %v209_v6  }
   0xe   : > { %s619_s12 = smov (!%p186_p4, %s510_s12), 1 }
   0xf   : > { %s445_s24 = sshll.u32 %s619_s12, 4  ;;  %s446_s9 = sshll.u32 %s619_s12, 5 }
  0x10   : > { %s193_s4 = scalar_lea.vmem %s610_s0, %s445_s24  ;;  %s201_s16 = scalar_lea.vmem %s613_s3, %s446_s9 }
  0x11   : > { %v206_v7 = vld [vmem:[%s193_s4] sm:$0xff]  ;;  %v207_v8 = vld [vmem:[%s193_s4 + $0x8] sm:$0xff] }
  0x12   : > { %v463_v9 = vpack.c.bf16 %v207_v8, %v206_v7 }
  0x14   : > { %464 = vmatprep.subr.bf16.mxu0 %v463_v9  ;;  %467 = vmatprep.subr.bf16.mxu1 %v463_v9 }
  0x15   : > { %466 = vmatpush3.bf16.msra.mxu0 %v463_v9  ;;  %468 = vmatpush3.bf16.msra.mxu1 %v463_v9 }
  0x18   : > { %458 = vmatmul.mubr.msk.f32.vlgmr.msra.gmra.mrb[0].mxu0 %vm232_vm0, %v203_v10  ;;  %461 = vmatmul.mubr.msk.f32.vlgmr.msra.gmra.mrb[0].mxu1 %vm232_vm0, %v205_v11 }
  0x88   : > { %v225_v12 = vpop.permute.xlu1 %224  ;;  %v215_v13 = vpop.permute.xlu0 %214 }
  0x8c   : > { %v230_v14 = vpop.permute.xlu1 %229  ;;  %v220_v15 = vpop.permute.xlu0 %219 }
  0xeb   : > { %v459_v16 = vpop.f32.mrb[0].mxu0  ;;  %v462_v17 = vpop.f32.mrb[0].mxu1 }
  0xec   : > { %v317_v18 = vadd.f32 %v459_v16, %v220_v15  ;;  %v327_v19 = vadd.f32 %v462_v17, %v230_v14  ;;  %v311_v20 = vpop.f32.mrb[1].mxu0  ;;  %v321_v21 = vpop.f32.mrb[1].mxu1 }
  0xed   : > { %v312_v22 = vadd.f32 %v311_v20, %v215_v13  ;;  %v322_v23 = vadd.f32 %v321_v21, %v225_v12 }
  0xee   : > { %vm331_vm2 = vcmp.gt.f32.partialorder %v317_v18, 0.0  ;;  %v335_v24 = vmul.f32 0.1, %v317_v18  ;;  %vm333_vm3 = vcmp.gt.f32.partialorder %v327_v19, 0.0  ;;  %v337_v25 = vmul.f32 0.1, %v327_v19 }
  0xef   : > { %vm330_vm4 = vcmp.gt.f32.partialorder %v312_v22, 0.0  ;;  %v334_v26 = vmul.f32 0.1, %v312_v22  ;;  %vm332_vm5 = vcmp.gt.f32.partialorder %v322_v23, 0.0  ;;  %v336_v27 = vmul.f32 0.1, %v322_v23 }
  0xf0   : > { %v339_v28 = vsel %vm331_vm2, %v317_v18, %v335_v24  ;;  %v341_v29 = vsel %vm333_vm3, %v327_v19, %v337_v25 }
  0xf1   : > { %344 = vst.msk [vmem:[%s201_s16 + $0x8] sm:$0xff] %vm342_vm1, %v339_v28  ;;  %346 = vst.msk [vmem:[%s201_s16 + $0x18] sm:$0xff] %vm342_vm1, %v341_v29  ;;  %v338_v30 = vsel %vm330_vm4, %v312_v22, %v334_v26  ;;  %v340_v31 = vsel %vm332_vm5, %v322_v23, %v336_v27 }
  0xf2   : > { %343 = vst.msk [vmem:[%s201_s16] sm:$0xff] %vm342_vm1, %v338_v30  ;;  %345 = vst.msk [vmem:[%s201_s16 + $0x10] sm:$0xff] %vm342_vm1, %v340_v31 }
  0xf3 PF: > { %s13_s14 = sadd.s32 1, %s518_s14   ;;  %s614_s12 = smov %s514_s13 }
  0xf4   : > { %p10_p5 = scmp.ge.s32.totalorder %s13_s14, 4   ;;  %s615_s13 = smov %s617_s15 }
  0xf6   :  { %12 = sbr.rel (!%p10_p5) target bundleno = 2 (0x2), region = 62 }

</bundles_post_ra>
